<compile_context>
chip_gen: v7x
topology: tpu7x:2x2x1
jax: 0.10.0
libtpu: 0.0.40
codegen_flags: <defaults>
</compile_context>

<pallas_src>
import functools
import numpy as np
import jax
import jax.numpy as jnp
from jax.experimental import pallas as pl
from jax.experimental.pallas import tpu as pltpu


def _round_up(x, m):
    return ((x + m - 1) // m) * m


# --------------------------------------------------------------------------
# Kernel: per-class masked sums via one-hot MXU matmul (tiled over M),
#         per-class counts via an XLU lane reduce (f32, exact),
#         merged with previous prototypes in the epilogue.
# --------------------------------------------------------------------------
def _make_proto_kernel(Kp, feat_dtype):
    def kernel(labels_ref, feats_ref, prev_ref, has_ref,
               out_ref, has_out_ref, acc_ref, cnt_ref):
        # grid = (page p in {fp, bp}, m tile over rows); m is the reduction.
        m = pl.program_id(1)

        @pl.when(m == 0)
        def _():
            acc_ref[...] = jnp.zeros_like(acc_ref)
            cnt_ref[...] = jnp.zeros_like(cnt_ref)

        labels = labels_ref[...]                                # [1, TILE_M]
        tile_m = labels.shape[1]
        cls = jax.lax.broadcasted_iota(jnp.int32, (Kp, tile_m), 0)
        onehot = (cls == labels).astype(jnp.float32)            # [Kp, TILE_M]
        # counts: XLU reduce (different VLIW slot than MXU/DMA -> free),
        # accumulated in f32 so large n_k*L stays exact.
        cnt_ref[...] += jnp.sum(onehot, axis=1, keepdims=True)
        # feature sums: one MXU matmul; one-hot 0/1 is exact in bf16.
        acc_ref[...] += jnp.dot(onehot.astype(feat_dtype), feats_ref[0],
                                preferred_element_type=jnp.float32)

        @pl.when(m == pl.num_programs(1) - 1)
        def _():
            counts = cnt_ref[...]            # [Kp, 1]  = n_k * L
            has = has_ref[0]                 # [Kp, 1]  {0,1}
            prev = prev_ref[0]               # [Kp, Cp]
            total = acc_ref[...] + prev * has
            # denom = n_k*L (+1 if a previous prototype exists); classes that
            # are absent AND have no previous proto get denom 1 -> output 0.
            denom = jnp.maximum(counts + has, 1.0)
            inv = pl.reciprocal(denom, approx=False)   # runs once; keep exact
            out_ref[0] = (total * inv).astype(out_ref.dtype)
            has_out_ref[0] = jnp.maximum(
                has, (counts > 0.0).astype(jnp.float32))
    return kernel


# --------------------------------------------------------------------------
# Fused, jitted table update (fp + bp in one pallas_call).
# --------------------------------------------------------------------------
@functools.partial(jax.jit,
                   static_argnames=("tile_m", "use_bf16", "feats_buffers"))
def proto_table_update(fp_feats, bp_feats, labels,
                       fp_table, fp_has, bp_table, bp_has,
                       *, tile_m=None, use_bf16=True, feats_buffers=2):
    """One fused prototype update for both the fp and bp tables.

    fp_feats/bp_feats : [M, C] features (M = N * L flattened rows)
    labels            : [M] int32 labels in [0, NUM_CLASSES)
    fp_table/bp_table : [NUM_CLASSES, C] running prototypes
    fp_has/bp_has     : [NUM_CLASSES] {0,1} "class already has a prototype"
    Returns (fp_table, fp_has, bp_table, bp_has), same shapes, updated.
    """
    M, C = fp_feats.shape
    K = fp_table.shape[0]

    Kp = _round_up(max(K, 8), 8)
    Cp = _round_up(C, 128)                       # no ones column -> no +1 pad
    feat_dtype = jnp.bfloat16 if use_bf16 else jnp.float32
    feat_bytes = 2 if use_bf16 else 4

    # ---- tile sizing from a VMEM budget (generation-safe) -----------------
    if tile_m is None:
        feats_budget = 24 << 20       # feats double-buffer cap; v7x-safe
        tm = feats_budget // (2 * Cp * feat_bytes)
        tm = max(128, min(4096, (tm // 128) * 128))
    else:
        tm = max(128, (int(tile_m) // 128) * 128)
    TILE_M = min(tm, _round_up(M, 128))
    Mp = _round_up(M, TILE_M)
    grid_m = Mp // TILE_M

    # ---- staging directly in the feed dtype; skip pads when aligned -------
    def prep_feats(x):
        x = x.astype(feat_dtype)
        if Mp != M or Cp != C:
            # zero row/col padding: padded rows can never poison the acc
            x = jnp.pad(x, ((0, Mp - M), (0, Cp - C)))
        return x

    feats = jnp.stack([prep_feats(fp_feats), prep_feats(bp_feats)])  # [2,Mp,Cp]

    labels_p = labels.astype(jnp.int32)
    if Mp != M:
        labels_p = jnp.pad(labels_p, (0, Mp - M), constant_values=-1)
    labels_p = labels_p.reshape(1, Mp)

    def prep_table(t):
        t = t.astype(jnp.float32)
        if Kp != K or Cp != C:
            t = jnp.pad(t, ((0, Kp - K), (0, Cp - C)))
        return t

    prev = jnp.stack([prep_table(fp_table), prep_table(bp_table)])   # [2,Kp,Cp]
    has = jnp.stack([
        jnp.pad(fp_has.astype(jnp.float32), (0, Kp - K)),
        jnp.pad(bp_has.astype(jnp.float32), (0, Kp - K)),
    ]).reshape(2, Kp, 1)

    # ---- explicit scoped-VMEM budget ---------------------------------------
    vmem_needed = (feats_buffers * TILE_M * Cp * feat_bytes   # feats pipeline
                   + 2 * Kp * Cp * 4                          # prev (dbl-buf)
                   + 2 * Kp * Cp * 4                          # out  (dbl-buf)
                   + Kp * Cp * 4                              # acc scratch
                   + Kp * 128 * 4                             # cnt (lane pad)
                   + 4 * TILE_M * 4)                          # labels, misc
    vmem_limit = int(min(max(vmem_needed + (8 << 20), 32 << 20), 128 << 20))

    feats_kwargs = {}
    if feats_buffers != 2:
        # deeper pipelining for bandwidth-starved generations (e.g. v5e)
        feats_kwargs["pipeline_mode"] = pl.Buffered(feats_buffers)
    feats_spec = pl.BlockSpec((1, TILE_M, Cp), lambda p, m: (p, m, 0),
                              **feats_kwargs)

    out, has_out = pl.pallas_call(
        _make_proto_kernel(Kp, feat_dtype),
        out_shape=(jax.ShapeDtypeStruct((2, Kp, Cp), jnp.float32),
                   jax.ShapeDtypeStruct((2, Kp, 1), jnp.float32)),
        grid_spec=pltpu.PrefetchScalarGridSpec(
            num_scalar_prefetch=0,
            grid=(2, grid_m),
            in_specs=[
                pl.BlockSpec((1, TILE_M), lambda p, m: (0, m)),         # labels
                feats_spec,                                             # feats
                pl.BlockSpec((1, Kp, Cp), lambda p, m: (p, 0, 0)),      # prev
                pl.BlockSpec((1, Kp, 1), lambda p, m: (p, 0, 0)),       # has
            ],
            out_specs=[
                pl.BlockSpec((1, Kp, Cp), lambda p, m: (p, 0, 0)),      # protos
                pl.BlockSpec((1, Kp, 1), lambda p, m: (p, 0, 0)),       # new has
            ],
            scratch_shapes=[pltpu.VMEM((Kp, Cp), jnp.float32),          # sums
                            pltpu.VMEM((Kp, 1), jnp.float32)],          # counts
        ),
        compiler_params=pltpu.CompilerParams(
            dimension_semantics=("parallel", "arbitrary"),
            vmem_limit_bytes=vmem_limit),
    )(labels_p, feats, prev, has)

    return (out[0, :K, :C], has_out[0, :K, 0],
            out[1, :K, :C], has_out[1, :K, 0])


# --------------------------------------------------------------------------
# Module-style forward: list inputs -> fused table update.
# --------------------------------------------------------------------------
def prototype_contrast_loss_forward(s_fp_list, s_bp_list, classes_list,
                                    fp_table, fp_has, bp_table, bp_has,
                                    *, use_bf16=True, tile_m=None,
                                    feats_buffers=2):
    classes = jnp.concatenate([c.astype(jnp.int32) for c in classes_list], 0)
    L = len(s_fp_list)
    N = classes.shape[0]
    C = s_fp_list[0].shape[-1]
    # pros[i].unsqueeze(1); cat(dim=1); view(-1, C)  ==  stack(axis=1).reshape
    fp = jnp.stack(s_fp_list, axis=1).reshape(N * L, C)
    bp = jnp.stack(s_bp_list, axis=1).reshape(N * L, C)
    labels = jnp.repeat(classes, L)
    # TODO(synk): labels outside [0, NUM_CLASSES) are silently dropped (table
    # semantics); the PyTorch dict accepts arbitrary integer keys.
    return proto_table_update(fp, bp, labels, fp_table, fp_has,
                              bp_table, bp_has, tile_m=tile_m,
                              use_bf16=use_bf16, feats_buffers=feats_buffers)


# --------------------------------------------------------------------------
# Host-side helpers (validation only, not on the hot path).
# --------------------------------------------------------------------------
def _table_to_dict(table, has):
    return {int(k): np.asarray(table[k:k + 1])
            for k in range(table.shape[0]) if has[k] > 0}


def _reference_numpy(s_fp_list, s_bp_list, classes_list, proto_dict, bp_proto_dict):
    """Pure numpy replica of the PyTorch dict semantics."""
    classes = np.concatenate([np.asarray(c) for c in classes_list], 0)
    C = np.asarray(s_fp_list[0]).shape[-1]
    pros_fp = np.stack([np.asarray(x) for x in s_fp_list], axis=1)  # [N, L, C]
    pros_bp = np.stack([np.asarray(x) for x in s_bp_list], axis=1)

    def _update(pros, d):
        out = {int(k): np.asarray(v, np.float32) for k, v in d.items()}
        for k in np.unique(classes):
            rows = pros[classes == k].reshape(-1, C)
            k = int(k)
            if k not in out:
                out[k] = rows.mean(0, keepdims=True)
            else:
                out[k] = np.concatenate([out[k], rows], 0).mean(0, keepdims=True)
        return out

    return _update(pros_fp, proto_dict), _update(pros_bp, bp_proto_dict)


if __name__ == "__main__":
    key = jax.random.PRNGKey(0)
    k1, k2, k3, k4, k5 = jax.random.split(key, 5)

    NUM_CLASSES, N, C, L = 8, 8, 32, 2
    s_fp_list = [jax.random.normal(k1, (N, C), jnp.float32),
                 jax.random.normal(k2, (N, C), jnp.float32)]
    s_bp_list = [jax.random.normal(k3, (N, C), jnp.float32),
                 jax.random.normal(k4, (N, C), jnp.float32)]
    classes_list = [jnp.array([0, 1, 2, 1], jnp.int32),
                    jnp.array([2, 0, 3, 1], jnp.int32)]

    # initial state: class 0 already has an fp prototype (exercises the merge)
    fp_table = jnp.zeros((NUM_CLASSES, C), jnp.float32)
    fp_table = fp_table.at[0].set(jax.random.normal(k5, (C,), jnp.float32))
    fp_has = jnp.zeros((NUM_CLASSES,), jnp.float32).at[0].set(1.0)
    bp_table = jnp.zeros((NUM_CLASSES, C), jnp.float32)
    bp_has = jnp.zeros((NUM_CLASSES,), jnp.float32)

    # ---- exact f32 path (validation against the dict-semantics reference) --
    new_fp, new_fp_has, new_bp, new_bp_has = prototype_contrast_loss_forward(
        s_fp_list, s_bp_list, classes_list, fp_table, fp_has, bp_table, bp_has,
        use_bf16=False)
    jax.block_until_ready((new_fp, new_fp_has, new_bp, new_bp_has))

    pd0 = _table_to_dict(np.asarray(fp_table), np.asarray(fp_has))
    bpd0 = _table_to_dict(np.asarray(bp_table), np.asarray(bp_has))
    pd_ref, bpd_ref = _reference_numpy(s_fp_list, s_bp_list, classes_list, pd0, bpd0)
    pd_new = _table_to_dict(np.asarray(new_fp), np.asarray(new_fp_has))
    bpd_new = _table_to_dict(np.asarray(new_bp), np.asarray(new_bp_has))
    assert set(pd_new) == set(pd_ref) and set(bpd_new) == set(bpd_ref)
    for k in pd_ref:
        np.testing.assert_allclose(pd_new[k], pd_ref[k], rtol=1e-5, atol=1e-5)
    for k in bpd_ref:
        np.testing.assert_allclose(bpd_new[k], bpd_ref[k], rtol=1e-5, atol=1e-5)

    # ---- default bf16 MXU feed (f32 accumulation; looser tolerance) --------
    b_fp, b_fp_has, b_bp, b_bp_has = prototype_contrast_loss_forward(
        s_fp_list, s_bp_list, classes_list, fp_table, fp_has, bp_table, bp_has)
    jax.block_until_ready((b_fp, b_fp_has, b_bp, b_bp_has))
    pd_b = _table_to_dict(np.asarray(b_fp), np.asarray(b_fp_has))
    bpd_b = _table_to_dict(np.asarray(b_bp), np.asarray(b_bp_has))
    assert set(pd_b) == set(pd_ref) and set(bpd_b) == set(bpd_ref)
    for k in pd_ref:
        np.testing.assert_allclose(pd_b[k], pd_ref[k], rtol=2e-2, atol=2e-2)
    for k in bpd_ref:
        np.testing.assert_allclose(bpd_b[k], bpd_ref[k], rtol=2e-2, atol=2e-2)

    print("KERNEL_OK")
</pallas_src>

<mosaic_0001>
module attributes {stable_mosaic.version = 11 : i64} {
  func.func @kernel(%arg0: i32, %arg1: i32, %arg2: memref<1x128xi32, #tpu.memory_space<vmem>>, %arg3: memref<1x128x128xf32, #tpu.memory_space<vmem>>, %arg4: memref<1x8x128xf32, #tpu.memory_space<vmem>>, %arg5: memref<1x8x1xf32, #tpu.memory_space<vmem>>, %arg6: memref<1x8x128xf32, #tpu.memory_space<vmem>>, %arg7: memref<1x8x1xf32, #tpu.memory_space<vmem>>, %arg8: memref<8x128xf32, #tpu.memory_space<vmem>>, %arg9: memref<8x1xf32, #tpu.memory_space<vmem>>) attributes {dimension_semantics = [#tpu.dimension_semantics<parallel>, #tpu.dimension_semantics<arbitrary>], iteration_bounds = array<i64: 2, 1>, scalar_prefetch = 0 : i64, scratch_operands = 2 : i64, tpu.core_type = #tpu.core_type<tc>, window_params = [{transform_indices = @transform_0, window_bounds = array<i64: 1, 128>}, {transform_indices = @transform_1, window_bounds = array<i64: 1, 128, 128>}, {transform_indices = @transform_2, window_bounds = array<i64: 1, 8, 128>}, {transform_indices = @transform_3, window_bounds = array<i64: 1, 8, 1>}, {transform_indices = @transform_4, window_bounds = array<i64: 1, 8, 128>}, {transform_indices = @transform_5, window_bounds = array<i64: 1, 8, 1>}]} {
    %c0_i32 = arith.constant 0 : i32
    %0 = arith.cmpi eq, %arg1, %c0_i32 : i32
    %1 = arith.extui %0 : i1 to i32
    %c0_i32_0 = arith.constant 0 : i32
    %2 = arith.cmpi ne, %1, %c0_i32_0 : i32
    scf.if %2 {
      %cst_16 = arith.constant 0.000000e+00 : f32
      %23 = vector.broadcast %cst_16 : f32 to vector<8x128xf32>
      %c0_17 = arith.constant 0 : index
      %c0_18 = arith.constant 0 : index
      %24 = vector.load %arg8[%c0_17, %c0_18] : memref<8x128xf32, #tpu.memory_space<vmem>>, vector<8x128xf32>
      tpu.vector_store %arg8[%c0_17, %c0_18], %23 {strides = array<i32>} : memref<8x128xf32, #tpu.memory_space<vmem>>, vector<8x128xf32>,
      %cst_19 = arith.constant 0.000000e+00 : f32
      %25 = vector.broadcast %cst_19 : f32 to vector<8x1xf32>
      %c0_20 = arith.constant 0 : index
      %c0_21 = arith.constant 0 : index
      %26 = vector.load %arg9[%c0_20, %c0_21] : memref<8x1xf32, #tpu.memory_space<vmem>>, vector<8x1xf32>
      tpu.vector_store %arg9[%c0_20, %c0_21], %25 {strides = array<i32>} : memref<8x1xf32, #tpu.memory_space<vmem>>, vector<8x1xf32>,
    } else {
    }
    %c0 = arith.constant 0 : index
    %c0_1 = arith.constant 0 : index
    %3 = vector.load %arg2[%c0, %c0_1] : memref<1x128xi32, #tpu.memory_space<vmem>>, vector<1x128xi32>
    %4 = tpu.iota {dimensions = array<i32: 0>} : vector<8x128xi32>
    %5 = vector.broadcast %3 : vector<1x128xi32> to vector<8x128xi32>
    %6 = arith.cmpi eq, %4, %5 : vector<8x128xi32>
    %7 = arith.extui %6 : vector<8x128xi1> to vector<8x128xi32>
    %8 = arith.sitofp %7 : vector<8x128xi32> to vector<8x128xf32>
    %c0_2 = arith.constant 0 : index
    %c0_3 = arith.constant 0 : index
    %9 = vector.load %arg9[%c0_2, %c0_3] : memref<8x1xf32, #tpu.memory_space<vmem>>, vector<8x1xf32>
    %cst = arith.constant dense<0.000000e+00> : vector<8xf32>
    %10 = vector.multi_reduction <add>, %8, %cst [1] : vector<8x128xf32> to vector<8xf32>
    %11 = vector.shape_cast %10 : vector<8xf32> to vector<8x1xf32>
    %12 = arith.addf %9, %11 : vector<8x1xf32>
    %c0_4 = arith.constant 0 : index
    %c0_5 = arith.constant 0 : index
    %13 = vector.load %arg9[%c0_4, %c0_5] : memref<8x1xf32, #tpu.memory_space<vmem>>, vector<8x1xf32>
    tpu.vector_store %arg9[%c0_4, %c0_5], %12 {strides = array<i32>} : memref<8x1xf32, #tpu.memory_space<vmem>>, vector<8x1xf32>,
    %c0_6 = arith.constant 0 : index
    %c0_7 = arith.constant 0 : index
    %14 = vector.load %arg8[%c0_6, %c0_7] : memref<8x128xf32, #tpu.memory_space<vmem>>, vector<8x128xf32>
    %c0_8 = arith.constant 0 : index
    %c0_9 = arith.constant 0 : index
    %c0_10 = arith.constant 0 : index
    %15 = vector.load %arg3[%c0_8, %c0_9, %c0_10] : memref<1x128x128xf32, #tpu.memory_space<vmem>>, vector<1x128x128xf32>
    %16 = vector.shape_cast %15 : vector<1x128x128xf32> to vector<128x128xf32>
    %cst_11 = arith.constant dense<0.000000e+00> : vector<8x128xf32>
    %17 = tpu.matmul %8, %16, %cst_11 {dimension_numbers = #tpu.dot_dimension_numbers<[1], [0], [0], [1], [0, 0, 1, 1], [], []>} : vector<8x128xf32>, vector<128x128xf32>, vector<8x128xf32> -> vector<8x128xf32>
    %18 = arith.addf %14, %17 : vector<8x128xf32>
    %c0_12 = arith.constant 0 : index
    %c0_13 = arith.constant 0 : index
    %19 = vector.load %arg8[%c0_12, %c0_13] : memref<8x128xf32, #tpu.memory_space<vmem>>, vector<8x128xf32>
    tpu.vector_store %arg8[%c0_12, %c0_13], %18 {strides = array<i32>} : memref<8x128xf32, #tpu.memory_space<vmem>>, vector<8x128xf32>,
    %c0_i32_14 = arith.constant 0 : i32
    %20 = arith.cmpi eq, %arg1, %c0_i32_14 : i32
    %21 = arith.extui %20 : i1 to i32
    %c0_i32_15 = arith.constant 0 : i32
    %22 = arith.cmpi ne, %21, %c0_i32_15 : i32
    scf.if %22 {
      %c0_16 = arith.constant 0 : index
      %c0_17 = arith.constant 0 : index
      %23 = vector.load %arg9[%c0_16, %c0_17] : memref<8x1xf32, #tpu.memory_space<vmem>>, vector<8x1xf32>
      %c0_18 = arith.constant 0 : index
      %c0_19 = arith.constant 0 : index
      %c0_20 = arith.constant 0 : index
      %24 = vector.load %arg5[%c0_18, %c0_19, %c0_20] : memref<1x8x1xf32, #tpu.memory_space<vmem>>, vector<1x8x1xf32>
      %25 = vector.shape_cast %24 : vector<1x8x1xf32> to vector<8x1xf32>
      %c0_21 = arith.constant 0 : index
      %c0_22 = arith.constant 0 : index
      %c0_23 = arith.constant 0 : index
      %26 = vector.load %arg4[%c0_21, %c0_22, %c0_23] : memref<1x8x128xf32, #tpu.memory_space<vmem>>, vector<1x8x128xf32>
      %27 = vector.shape_cast %26 : vector<1x8x128xf32> to vector<8x128xf32>
      %c0_24 = arith.constant 0 : index
      %c0_25 = arith.constant 0 : index
      %28 = vector.load %arg8[%c0_24, %c0_25] : memref<8x128xf32, #tpu.memory_space<vmem>>, vector<8x128xf32>
      %29 = vector.broadcast %25 : vector<8x1xf32> to vector<8x128xf32>
      %30 = arith.mulf %27, %29 : vector<8x128xf32>
      %31 = arith.addf %28, %30 : vector<8x128xf32>
      %32 = arith.addf %23, %25 : vector<8x1xf32>
      %cst_26 = arith.constant 1.000000e+00 : f32
      %33 = vector.broadcast %cst_26 : f32 to vector<8x1xf32>
      %34 = arith.maximumf %32, %33 : vector<8x1xf32>
      %35 = tpu.reciprocal %34 : vector<8x1xf32> -> vector<8x1xf32>
      %36 = vector.broadcast %35 : vector<8x1xf32> to vector<8x128xf32>
      %37 = arith.mulf %31, %36 : vector<8x128xf32>
      %c0_27 = arith.constant 0 : index
      %c0_28 = arith.constant 0 : index
      %c0_29 = arith.constant 0 : index
      %38 = vector.load %arg6[%c0_27, %c0_28, %c0_29] : memref<1x8x128xf32, #tpu.memory_space<vmem>>, vector<1x8x128xf32>
      %39 = vector.shape_cast %38 : vector<1x8x128xf32> to vector<8x128xf32>
      %40 = vector.shape_cast %37 : vector<8x128xf32> to vector<1x8x128xf32>
      tpu.vector_store %arg6[%c0_27, %c0_28, %c0_29], %40 {strides = array<i32>} : memref<1x8x128xf32, #tpu.memory_space<vmem>>, vector<1x8x128xf32>,
      %cst_30 = arith.constant 0.000000e+00 : f32
      %41 = vector.broadcast %cst_30 : f32 to vector<8x1xf32>
      %42 = arith.cmpf ogt, %23, %41 : vector<8x1xf32>
      %43 = arith.extui %42 : vector<8x1xi1> to vector<8x1xi32>
      %44 = arith.sitofp %43 : vector<8x1xi32> to vector<8x1xf32>
      %45 = arith.maximumf %25, %44 : vector<8x1xf32>
      %c0_31 = arith.constant 0 : index
      %c0_32 = arith.constant 0 : index
      %c0_33 = arith.constant 0 : index
      %46 = vector.load %arg7[%c0_31, %c0_32, %c0_33] : memref<1x8x1xf32, #tpu.memory_space<vmem>>, vector<1x8x1xf32>
      %47 = vector.shape_cast %46 : vector<1x8x1xf32> to vector<8x1xf32>
      %48 = vector.shape_cast %45 : vector<8x1xf32> to vector<1x8x1xf32>
      tpu.vector_store %arg7[%c0_31, %c0_32, %c0_33], %48 {strides = array<i32>} : memref<1x8x1xf32, #tpu.memory_space<vmem>>, vector<1x8x1xf32>,
    } else {
    }
    return
  }
  func.func @transform_0(%arg0: i32, %arg1: i32) -> (i32, i32) {
    %c0_i32 = arith.constant 0 : i32
    %c0_i32_0 = arith.constant 0 : i32
    return %c0_i32, %arg1 : i32, i32
  }
  func.func @transform_1(%arg0: i32, %arg1: i32) -> (i32, i32, i32) {
    %c0_i32 = arith.constant 0 : i32
    %c0_i32_0 = arith.constant 0 : i32
    return %arg0, %arg1, %c0_i32 : i32, i32, i32
  }
  func.func @transform_2(%arg0: i32, %arg1: i32) -> (i32, i32, i32) {
    %c0_i32 = arith.constant 0 : i32
    %c0_i32_0 = arith.constant 0 : i32
    %c0_i32_1 = arith.constant 0 : i32
    return %arg0, %c0_i32, %c0_i32_0 : i32, i32, i32
  }
  func.func @transform_3(%arg0: i32, %arg1: i32) -> (i32, i32, i32) {
    %c0_i32 = arith.constant 0 : i32
    %c0_i32_0 = arith.constant 0 : i32
    %c0_i32_1 = arith.constant 0 : i32
    return %arg0, %c0_i32, %c0_i32_0 : i32, i32, i32
  }
  func.func @transform_4(%arg0: i32, %arg1: i32) -> (i32, i32, i32) {
    %c0_i32 = arith.constant 0 : i32
    %c0_i32_0 = arith.constant 0 : i32
    %c0_i32_1 = arith.constant 0 : i32
    return %arg0, %c0_i32, %c0_i32_0 : i32, i32, i32
  }
  func.func @transform_5(%arg0: i32, %arg1: i32) -> (i32, i32, i32) {
    %c0_i32 = arith.constant 0 : i32
    %c0_i32_0 = arith.constant 0 : i32
    %c0_i32_1 = arith.constant 0 : i32
    return %arg0, %c0_i32, %c0_i32_0 : i32, i32, i32
  }
}

</mosaic_0001>

<bundles_post_ra>
// kernel: proto_table_update.1
= control target key start
LH: loop header
LB: loop body
LE: loop exit
PB: predicated region body
PF: predicated region fallthrough
CT: control target
= control target key end

     0   :  { %s773_s18 = smov 0   ;;  %s775_s19 = smov 0   ;;  %s855_s0 = inlined_call_operand.vmem [shape: s32[1,128], index: 0, kind: input, shape index: {}]   ;;  %s856_s1 = inlined_call_operand.vmem [shape: f32[2,128,128], index: 1, kind: input, shape index: {}]   ;;  %s857_s2 = inlined_call_operand.vmem [shape: f32[2,8,128], index: 2, kind: input, shape index: {}]   ;;  %s858_s3 = inlined_call_operand.vmem [shape: f32[2,8,1], index: 3, kind: input, shape index: {}]   ;;  %s859_s4 = inlined_call_operand.vmem [shape: f32[2,8,128], index: 4, kind: output, shape index: {0}]   ;;  %s860_s5 = inlined_call_operand.vmem [shape: f32[2,8,1], index: 5, kind: output, shape index: {1}]  }
   0x1   :  { %s777_s20 = smov 0  }
   0x2 LB: > { %s28_s21 = sadd.s32 1, %s732_s19  ;;  %p591_p0 = scmp.ge.s32.totalorder %s736_s20, 1  ;;  %s736_s20 = sphi %s777_s20, %s16_s20   ;;  %s732_s19 = sphi %s775_s19, %s862_s19   ;;  %s728_s18 = sphi %s773_s18, %s861_s18  }
   0x3   : > { %p30_p1 = scmp.ge.s32.totalorder %s28_s21, 2  ;;  %p235_p2 = scmp.lt.s32.totalorder %s736_s20, 3 }
   0x5   : > { %s864_s21 = smov (%p30_p1, %s28_s21), 0  ;;  %p236_p3 = pnand %p591_p0, %p235_p2 }
   0x6   : > { %v318_v0 = vlaneseq (!%p236_p3)  ;;  %vm315_vm0 = vcmask (!%p236_p3), 7168   ;;  %p285_p4 = scmp.lt.s32.totalorder (!%p236_p3), %s728_s18, 1  ;;  %v598_v1 = vld [vmem:[%s855_s0] ss:$0 sm:$0xff] (!%p236_p3)  ;;  %v738_v2 = vmov (!%p236_p3), 0.0   ;;  %v739_v3 = vmov (!%p236_p3), 0.0|0.0  }
   0x7   : > { %239 = sbr.rel (%p236_p3) target bundleno = 310 (0x136), region = 36  ;;  %316 = vst.msk [vmem:[#allocation3] sm:$0xff] (!%p236_p3), %vm315_vm0, %v738_v2  ;;  %657 = vmatprep.subr.bf16.mxu0 (!%p236_p3), %v739_v3  ;;  %vm740_vm1 = vmmov (!%p236_p3), 0   ;;  %v741_v23 = vmov (!%p236_p3), 0   ;;  %v742_v32 = vmov (!%p236_p3), 1.0  }
   0x8   : > { %v319_v4 = vshrl.u32 (!%p236_p3), %v318_v0, 7  ;;  %654 = vmatprep.mubr.msk.f32.mxu0 (!%p236_p3), %vm740_vm1, %v738_v2  ;;  %710 = vset.pattern.permute.xlu0 (!%p236_p3), %v741_v23 }
   0x9   : > { %711 = vset.pattern.permute.xlu1 (!%p236_p3), %v741_v23 }
   0xa   : > { %vm324_vm2 = vcmp.eq.s32.totalorder (!%p236_p3), %v319_v4, %v598_v1 }
   0xb   : > { %v599_v5 = vsel (!%p236_p3), %vm324_vm2, 1.0, %v738_v2 }
   0xc   : > { %328 = vadd.xlane.f32.xlu0 (!%p236_p3), %v599_v5 }
   0xe   : > { %s866_s18 = smov (!%p285_p4, %s728_s18), 1  ;;  %v327_v33 = vld [vmem:[#allocation3] sm:$0xff] }
   0xf   : > { %s604_s24 = sshll.u32 %s866_s18, 7  ;;  %s820_s28 = sshll.u32 %s866_s18, 3 }
  0x10   : > { %s805_s27 = scalar_lea.vmem %s856_s1, %s604_s24  ;;  %s301_s6 = scalar_lea.vmem %s858_s3, %s820_s28 }
  0x11   : > { %v334_v6 = vld [vmem:[%s805_s27] sm:$0xff]  ;;  %v335_v7 = vld [vmem:[%s805_s27 + $0x8] sm:$0xff]  ;;  %v336_v8 = vld [vmem:[%s805_s27 + $0x10] sm:$0xff]  ;;  %s309_s9 = scalar_lea.vmem %s860_s5, %s820_s28  ;;  %s297_s12 = scalar_lea.vmem %s857_s2, %s820_s28 }
  0x12   : > { %v658_v9 = vpack.c.bf16 %v335_v7, %v334_v6  ;;  %v337_v10 = vld [vmem:[%s805_s27 + $0x18] sm:$0xff]  ;;  %v338_v12 = vld [vmem:[%s805_s27 + $0x20] sm:$0xff]  ;;  %v339_v13 = vld [vmem:[%s805_s27 + $0x28] sm:$0xff]  ;;  %s305_s15 = scalar_lea.vmem %s859_s4, %s820_s28 }
  0x13   : > { %v661_v11 = vpack.c.bf16 %v337_v10, %v336_v8  ;;  %v664_v14 = vpack.c.bf16 %v339_v13, %v338_v12  ;;  %v340_v15 = vld [vmem:[%s805_s27 + $0x30] sm:$0xff]  ;;  %v341_v16 = vld [vmem:[%s805_s27 + $0x38] sm:$0xff]  ;;  %v342_v18 = vld [vmem:[%s805_s27 + $0x40] sm:$0xff] }
  0x14   : > { %659 = vmatpush3.bf16.msra.mxu0 %v658_v9  ;;  %v667_v17 = vpack.c.bf16 %v341_v16, %v340_v15  ;;  %v343_v19 = vld [vmem:[%s805_s27 + $0x48] sm:$0xff]  ;;  %v344_v21 = vld [vmem:[%s805_s27 + $0x50] sm:$0xff]  ;;  %v345_v22 = vld [vmem:[%s805_s27 + $0x58] sm:$0xff] }
  0x15   : > { %660 = vmatprep.subr.bf16.mxu0 %v739_v3  ;;  %v670_v20 = vpack.c.bf16 %v343_v19, %v342_v18  ;;  %v673_v24 = vpack.c.bf16 %v345_v22, %v344_v21  ;;  %v346_v25 = vld [vmem:[%s805_s27 + $0x60] sm:$0xff]  ;;  %v347_v26 = vld [vmem:[%s805_s27 + $0x68] sm:$0xff]  ;;  %v348_v29 = vld [vmem:[%s805_s27 + $0x70] sm:$0xff] }
  0x16   : > { %v676_v27 = vpack.c.bf16 %v347_v26, %v346_v25  ;;  %v426_v28 = vld [vmem:[%s301_s6] sm:$0xff]  ;;  %v349_v30 = vld [vmem:[%s805_s27 + $0x78] sm:$0xff] }
  0x17   : > { %v679_v31 = vpack.c.bf16 %v349_v30, %v348_v29  ;;  %v427_v45 = vld [vmem:[%s297_s12] sm:$0xff] }
  0x18   : > { %662 = vmatpush3.bf16.msra.mxu0 %v661_v11 }
  0x19   : > { %663 = vmatprep.subr.bf16.mxu0 %v739_v3 }
  0x1c   : > { %665 = vmatpush3.bf16.msra.mxu0 %v664_v14 }
  0x1d   : > { %666 = vmatprep.subr.bf16.mxu0 %v739_v3 }
  0x20   : > { %668 = vmatpush3.bf16.msra.mxu0 %v667_v17 }
  0x21   : > { %669 = vmatprep.subr.bf16.mxu0 %v739_v3 }
  0x22   : > { %431 = vperm.xlu0 %710, %v426_v28  }
  0x24   : > { %671 = vmatpush3.bf16.msra.mxu0 %v670_v20 }
  0x25   : > { %672 = vmatprep.subr.bf16.mxu0 %v739_v3 }
  0x28   : > { %674 = vmatpush3.bf16.msra.mxu0 %v673_v24 }
  0x29   : > { %675 = vmatprep.subr.bf16.mxu0 %v739_v3 }
  0x2c   : > { %677 = vmatpush3.bf16.msra.mxu0 %v676_v27 }
  0x2d   : > { %678 = vmatprep.subr.bf16.mxu0 %v739_v3 }
  0x30   : > { %680 = vmatpush3.bf16.msra.mxu0 %v679_v31 }
  0x33   : > { %655 = vmatmul.mubr.msk.f32.vlgmr.msra.gmra.mrb[0].mxu0 %vm324_vm2, %v742_v32 }
  0x99   : > { %v329_v34 = vpop.xlane.xlu0 %328 }
  0x9a   : > { %v330_v35 = vadd.f32 %v329_v34, %v327_v33 }
  0x9c   : > { %332 = vst.msk [vmem:[#allocation3] sm:$0xff] %vm315_vm0, %v330_v35 }
  0xa1   : > { %v432_v44 = vpop.permute.xlu0 %431 }
  0xa2   : > { %v434_v46 = vmul.f32 %v432_v44, %v427_v45 }
  0xa3   : > { %v425_v36 = vld [vmem:[#allocation3] sm:$0xff] }
  0xa4   : > { %vm446_vm3 = vcmp.gt.f32.partialorder %v425_v36, 0.0  ;;  %v436_v37 = vadd.f32 %v426_v28, %v425_v36 }
  0xa5   : > { %v601_v38 = vsel %vm446_vm3, 1.0, %v738_v2 }
  0xa6   : > { %v437_v39 = vmax.f32 %v436_v37, 1.0  ;;  %v449_v40 = vmax.f32 %v426_v28, %v601_v38 }
  0xa8   : > { %712 = vrcp.f32 %v437_v39  ;;  %450 = vst.msk [vmem:[%s309_s9] sm:$0xff] %vm315_vm0, %v449_v40 }
  0xb2   : > { %v713_v41 = vpop.eup %712 }
  0xb3   : > { %441 = vperm.xlu1 %711, %v713_v41  }
 0x106   : > { %v416_v42 = vpop.f32.mrb[0].mxu0 }
 0x107   : > { %v656_v43 = vpop.f32.mrb[1].mxu0  ;;  %v435_v47 = vadd.f32 %v434_v46, %v416_v42 }
 0x132   : > { %v442_v48 = vpop.permute.xlu1 %441 }
 0x133   : > { %v444_v49 = vmul.f32 %v442_v48, %v435_v47 }
 0x135   : > { %445 = vst [vmem:[%s305_s15] sm:$0xff] %v444_v49 }
 0x136 PF: > { %s16_s20 = sadd.s32 1, %s736_s20   ;;  %s861_s18 = smov %s732_s19 }
 0x137   : > { %p13_p5 = scmp.ge.s32.totalorder %s16_s20, 4   ;;  %s862_s19 = smov %s864_s21 }
 0x139   :  { %15 = sbr.rel (!%p13_p5) target bundleno = 2 (0x2), region = 95 }

</bundles_post_ra>
